<compile_context>
chip_gen: v6e
topology: v6e:2x2x1
jax: 0.10.0
libtpu: 0.0.40
codegen_flags: <defaults>
</compile_context>

<pallas_src>
import jax
import jax.numpy as jnp
from jax.experimental import pallas as pl
from jax.experimental.pallas import tpu as pltpu

_LANE = 128
_SUBLANE = 8


def _round_up(x, m):
    return ((x + m - 1) // m) * m


def _round_down(x, m):
    return (x // m) * m


def _make_mlp_kernel(n_hidden: int):
    """Kernel for n_hidden (Linear->ReLU) layers followed by Linear(., 1).

    Ref order: x, w0, b0, ..., w_{n-1}, b_{n-1}, w_lastT (8, Hp), b_last (1, 1), out.
    """

    def kernel(x_ref, *refs):
        o_ref = refs[-1]                       # (1, 1, tile)
        h = x_ref[...]                         # (tile, D)
        for i in range(n_hidden):
            w = refs[2 * i][...]               # (in_p, out_p), MXU dtype
            b = refs[2 * i + 1][...]           # (1, out_p), f32
            lhs = h if h.dtype == w.dtype else h.astype(w.dtype)
            h = jnp.dot(lhs, w, preferred_element_type=jnp.float32)
            h = jnp.maximum(h + b, 0.0)        # f32 bias+ReLU on the VPU

        # Final hid -> 1 layer as a "weight-row @ h^T" MXU matmul (the standard
        # q @ k.T contraction pattern): the result arrives directly as a
        # lane-dense (., tile) row, so the output store is unmasked and no
        # (tile, 1) column / in-kernel transpose is needed. The weight row is
        # zero-padded to 8 sublanes for a well-formed MXU operand.
        w_last = refs[2 * n_hidden][...]       # (8, Hp), MXU dtype (rows 1..7 zero)
        b_last = refs[2 * n_hidden + 1][...]   # (1, 1), f32
        hf = h if h.dtype == w_last.dtype else h.astype(w_last.dtype)
        out = jax.lax.dot_general(
            w_last, hf, (((1,), (1,)), ((), ())),
            preferred_element_type=jnp.float32)           # (8, tile)
        o_ref[0] = (out[0:1, :] + b_last).astype(o_ref.dtype)

    return kernel


def _pad_params(params, mxu_dtype):
    """Pad hidden widths only to the MXU K-packing multiple (8 f32 / 16 bf16).

    In-dims chain to the previous layer's padded width; the final (hid, 1)
    weight is passed as a (8, hid_pad) row block (row 0 real, rows 1..7 zero)
    for the lane-dense head matmul. Padding is exact: padded weight rows/cols
    and bias lanes are zero and ReLU(0) = 0, so padded h columns stay zero.
    Weights are stored in mxu_dtype; biases are kept f32 (bias/ReLU run f32).
    Returns the flat list [w0, b0, ..., w_lastT, b_last].
    """
    pack = _SUBLANE * (4 // jnp.dtype(mxu_dtype).itemsize)
    n = len(params)
    flat = []
    prev = int(params[0][0].shape[0])          # first in-dim = state_dim, unpadded
    for i, (w, b) in enumerate(params):
        in_dim, out_dim = map(int, w.shape)
        b = jnp.asarray(b).reshape(1, out_dim).astype(jnp.float32)
        if i == n - 1:
            assert out_dim == 1, "V_Critic output layer must have width 1"
            wp = jnp.zeros((_SUBLANE, prev), mxu_dtype)
            wp = wp.at[0, :in_dim].set(w[:, 0].astype(mxu_dtype))
            flat.extend([wp, b])               # b_last: (1, 1) f32
        else:
            out_pad = _round_up(out_dim, pack)
            wp = jnp.zeros((prev, out_pad), mxu_dtype)
            wp = wp.at[:in_dim, :out_dim].set(w.astype(mxu_dtype))
            bp = jnp.zeros((1, out_pad), jnp.float32).at[:, :out_dim].set(b)
            flat.extend([wp, bp])
            prev = out_pad
    return flat


def _vmem_limits():
    """Generation-aware scoped-VMEM limit (v5e/v6e 128 MiB -> ~96 MiB scoped,
    v7x 64 MiB -> ~48 MiB) and the tile-selection budget derived from it."""
    cap = 64 * 1024 * 1024
    try:
        info = pltpu.get_tpu_info()
        cap = int(getattr(info, "vmem_capacity_bytes", cap) or cap)
    except Exception:
        pass
    limit = max(32 * 1024 * 1024, min(cap * 3 // 4, 100 * 1024 * 1024))
    budget = limit - 4 * 1024 * 1024
    return limit, budget


def _choose_tile(batch, state_dim, in_itemsize, flat, budget, max_tile=1024):
    """Largest batch tile (multiple of 128, so the (1, tile) output row is
    lane-dense and b_pad stays divisible) whose double-buffered state/output
    blocks + resident weights + live f32 intermediates fit the VMEM budget,
    capped so the grid has >= 2 steps when the batch allows it (v7x megacore)."""

    def blk(shape, itemsize):
        # (8,128)-tiled VMEM footprint of a 2D block.
        return (_round_up(int(shape[0]), _SUBLANE)
                * _round_up(int(shape[1]), _LANE) * itemsize)

    # Conservatively assume the weights end up double-buffered (in case the
    # single-buffer pipeline_mode is not honored on this jax version).
    w_bytes = 2 * sum(blk(a.shape, a.dtype.itemsize) for a in flat)
    h_lanes = max([_round_up(state_dim, _LANE)]
                  + [_round_up(int(a.shape[1]), _LANE) for a in flat[0::2]])

    b128 = _round_up(batch, _LANE)
    tile = min(_round_up(max_tile, _LANE), b128)
    if b128 >= 2 * _LANE:                       # ensure >= 2 grid steps
        tile = min(tile, max(_LANE, _round_down(b128 // 2, _LANE)))
    while tile > _LANE:
        need = (w_bytes
                + 2 * blk((tile, state_dim), in_itemsize)   # state, dbl-buffered
                + 2 * blk((1, tile), 4)                     # output row, dbl-buffered
                + 2 * tile * h_lanes * 4)                   # live f32 intermediates
        if need <= budget:
            break
        tile = max(_LANE, _round_down(tile // 2, _LANE))    # stays a 128-multiple
    # TODO(synk): if the resident weights alone blow the budget (very wide
    # critics on v7x's 64 MiB VMEM), stream weights over a second grid axis /
    # pltpu.emit_pipeline instead of shrinking the batch tile further.
    return tile


def v_critic_forward(state, params, *, mxu_dtype=jnp.bfloat16, max_tile_b=1024):
    """Run the fused V_Critic MLP as one tiled Pallas call.

    state:  (B, state_dim) float32 or bfloat16 (bf16 state halves the dominant
            HBM read stream -- recommended on v5e/v6e).
    params: list of (W, b) with W: (in, out), b: (1, out) or (out,).
    mxu_dtype: operand dtype fed to the MXU. Default bf16 (v6e/v7x are
            bf16-native); accumulation, bias-add and ReLU stay f32. Pass
            jnp.float32 for strict f32 matmuls.
    returns (B, 1) float32.
    """
    batch, state_dim = state.shape
    flat = _pad_params(params, mxu_dtype)
    limit, budget = _vmem_limits()
    tile = _choose_tile(batch, state_dim, state.dtype.itemsize, flat, budget,
                        max_tile=max_tile_b)
    b_pad = _round_up(batch, tile)
    if b_pad != batch:
        state = jnp.pad(state, ((0, b_pad - batch), (0, 0)))
    num_tiles = b_pad // tile

    n_hidden = len(params) - 1
    kernel = _make_mlp_kernel(n_hidden)

    weight_hbm = sum(int(a.size) * a.dtype.itemsize for a in flat)
    flops = 2 * b_pad * sum(int(w.shape[0]) * int(w.shape[1]) for w, _ in params)
    bytes_accessed = (b_pad * state_dim * state.dtype.itemsize
                      + weight_hbm + b_pad * 4)

    def _tile_map(i):
        return (i, 0)

    def _out_map(i):
        return (i, 0, 0)

    def _const_map(i):           # weights: same block every step -> DMA'd once
        return (0, 0)

    def _build(single_buffer_weights):
        if single_buffer_weights:
            # Constant-index resident weights don't need double buffers.
            w_specs = [pl.BlockSpec(a.shape, _const_map,
                                    pipeline_mode=pl.Buffered(1)) for a in flat]
        else:
            w_specs = [pl.BlockSpec(a.shape, _const_map) for a in flat]
        return pl.pallas_call(
            kernel,
            # (num_tiles, 1, tile): block (1, 1, tile) equals the full array
            # extent on the last two dims -> lane-dense, unmasked output stores.
            out_shape=jax.ShapeDtypeStruct((num_tiles, 1, tile), jnp.float32),
            grid=(num_tiles,),
            in_specs=[pl.BlockSpec((tile, state_dim), _tile_map)] + w_specs,
            out_specs=pl.BlockSpec((1, 1, tile), _out_map),
            compiler_params=pltpu.CompilerParams(
                dimension_semantics=("parallel",),   # batch tiles independent
                vmem_limit_bytes=limit),
            cost_estimate=pl.CostEstimate(
                flops=flops, transcendentals=0, bytes_accessed=bytes_accessed),
        )

    try:
        out = _build(True)(state, *flat)
    except Exception:
        # pipeline_mode=pl.Buffered(1) not accepted on this jax version; fall
        # back to default double-buffering (weights are still DMA'd only once).
        out = _build(False)(state, *flat)

    return out.reshape(b_pad, 1)[:batch]


def init_v_critic_params(key, state_dim, hid_shape, hid_layers,
                         dtype=jnp.float32):
    """Deterministic init matching the PyTorch layer-size construction."""
    layer_dims = [state_dim] + list(hid_shape) * hid_layers + [1]
    params = []
    for i in range(len(layer_dims) - 1):
        fan_in, fan_out = layer_dims[i], layer_dims[i + 1]
        key, wk, bk = jax.random.split(key, 3)
        bound = 1.0 / (fan_in ** 0.5)  # same scale as torch.nn.Linear default
        w = jax.random.uniform(wk, (fan_in, fan_out), jnp.float32, -bound, bound)
        b = jax.random.uniform(bk, (1, fan_out), jnp.float32, -bound, bound)
        params.append((w.astype(dtype), b.astype(dtype)))
    return params


def v_critic_ref(state, params):
    """Pure-JAX f32 reference for correctness checking."""
    h = state.astype(jnp.float32)
    n = len(params)
    for i, (w, b) in enumerate(params):
        w = w.astype(jnp.float32)
        b = jnp.asarray(b).reshape(1, -1).astype(jnp.float32)
        h = h @ w + b
        if i < n - 1:
            h = jnp.maximum(h, 0.0)
    return h


if __name__ == "__main__":
    key = jax.random.PRNGKey(0)

    batch = 2
    state_dim = 32
    hid_shape = (32,)
    hid_layers = 2  # -> layer dims [32, 32, 32, 1]

    key, pk, xk = jax.random.split(key, 3)
    params = init_v_critic_params(pk, state_dim, hid_shape, hid_layers)
    state = jax.random.normal(xk, (batch, state_dim), jnp.float32)

    # Strict f32-MXU path: tight check against the f32 reference.
    out = jax.block_until_ready(
        v_critic_forward(state, params, mxu_dtype=jnp.float32))
    ref = v_critic_ref(state, params)
    assert out.shape == (batch, 1), out.shape
    assert jnp.allclose(out, ref, atol=1e-4, rtol=1e-3), (out, ref)

    # Larger batch: exercises batch padding, a multi-tile "parallel" grid, and
    # the default bf16-MXU path (f32 accumulation / bias / ReLU).
    key, xk2 = jax.random.split(key)
    state2 = jax.random.normal(xk2, (300, state_dim), jnp.float32)
    out2 = jax.block_until_ready(v_critic_forward(state2, params))
    ref2 = v_critic_ref(state2, params)
    assert out2.shape == (300, 1), out2.shape
    assert jnp.allclose(out2, ref2, atol=3e-2, rtol=3e-2), (out2, ref2)

    # bf16 weight storage + bf16 state: halves both dominant HBM streams
    # (state read, one-time weight DMA). Loose tolerance for reduced precision.
    params_bf16 = [(w.astype(jnp.bfloat16), b.astype(jnp.bfloat16))
                   for w, b in params]
    out3 = jax.block_until_ready(
        v_critic_forward(state2.astype(jnp.bfloat16), params_bf16))
    ref3 = v_critic_ref(state2.astype(jnp.bfloat16), params_bf16)
    assert out3.shape == (300, 1), out3.shape
    assert jnp.allclose(out3, ref3, atol=5e-2, rtol=5e-2)

    print("KERNEL_OK")
</pallas_src>

<mosaic_0001>
module attributes {stable_mosaic.version = 11 : i64} {
  func.func @kernel(%arg0: i32, %arg1: memref<128x32xf32, #tpu.memory_space<vmem>>, %arg2: memref<32x32xf32, #tpu.memory_space<vmem>>, %arg3: memref<1x32xf32, #tpu.memory_space<vmem>>, %arg4: memref<32x32xf32, #tpu.memory_space<vmem>>, %arg5: memref<1x32xf32, #tpu.memory_space<vmem>>, %arg6: memref<8x32xf32, #tpu.memory_space<vmem>>, %arg7: memref<1x1xf32, #tpu.memory_space<vmem>>, %arg8: memref<1x1x128xf32, #tpu.memory_space<vmem>>) attributes {dimension_semantics = [#tpu.dimension_semantics<parallel>], iteration_bounds = array<i64: 1>, scalar_prefetch = 0 : i64, scratch_operands = 0 : i64, tpu.core_type = #tpu.core_type<tc>, window_params = [{transform_indices = @transform_0, window_bounds = array<i64: 128, 32>}, {pipeline_mode = #tpu.pipeline_mode<synchronous>, transform_indices = @transform_1, window_bounds = array<i64: 32, 32>}, {pipeline_mode = #tpu.pipeline_mode<synchronous>, transform_indices = @transform_2, window_bounds = array<i64: 1, 32>}, {pipeline_mode = #tpu.pipeline_mode<synchronous>, transform_indices = @transform_3, window_bounds = array<i64: 32, 32>}, {pipeline_mode = #tpu.pipeline_mode<synchronous>, transform_indices = @transform_4, window_bounds = array<i64: 1, 32>}, {pipeline_mode = #tpu.pipeline_mode<synchronous>, transform_indices = @transform_5, window_bounds = array<i64: 8, 32>}, {pipeline_mode = #tpu.pipeline_mode<synchronous>, transform_indices = @transform_6, window_bounds = array<i64: 1, 1>}, {transform_indices = @transform_7, window_bounds = array<i64: 1, 1, 128>}]} {
    %c0 = arith.constant 0 : index
    %c0_0 = arith.constant 0 : index
    %0 = vector.load %arg1[%c0, %c0_0] : memref<128x32xf32, #tpu.memory_space<vmem>>, vector<128x32xf32>
    %c0_1 = arith.constant 0 : index
    %c0_2 = arith.constant 0 : index
    %1 = vector.load %arg2[%c0_1, %c0_2] : memref<32x32xf32, #tpu.memory_space<vmem>>, vector<32x32xf32>
    %c0_3 = arith.constant 0 : index
    %c0_4 = arith.constant 0 : index
    %2 = vector.load %arg3[%c0_3, %c0_4] : memref<1x32xf32, #tpu.memory_space<vmem>>, vector<1x32xf32>
    %cst = arith.constant dense<0.000000e+00> : vector<128x32xf32>
    %3 = tpu.matmul %0, %1, %cst {dimension_numbers = #tpu.dot_dimension_numbers<[1], [0], [0], [1], [0, 0, 1, 1], [], []>} : vector<128x32xf32>, vector<32x32xf32>, vector<128x32xf32> -> vector<128x32xf32>
    %4 = vector.broadcast %2 : vector<1x32xf32> to vector<128x32xf32>
    %5 = arith.addf %3, %4 : vector<128x32xf32>
    %cst_5 = arith.constant 0.000000e+00 : f32
    %6 = vector.broadcast %cst_5 : f32 to vector<128x32xf32>
    %7 = arith.maximumf %5, %6 : vector<128x32xf32>
    %c0_6 = arith.constant 0 : index
    %c0_7 = arith.constant 0 : index
    %8 = vector.load %arg4[%c0_6, %c0_7] : memref<32x32xf32, #tpu.memory_space<vmem>>, vector<32x32xf32>
    %c0_8 = arith.constant 0 : index
    %c0_9 = arith.constant 0 : index
    %9 = vector.load %arg5[%c0_8, %c0_9] : memref<1x32xf32, #tpu.memory_space<vmem>>, vector<1x32xf32>
    %cst_10 = arith.constant dense<0.000000e+00> : vector<128x32xf32>
    %10 = tpu.matmul %7, %8, %cst_10 {dimension_numbers = #tpu.dot_dimension_numbers<[1], [0], [0], [1], [0, 0, 1, 1], [], []>} : vector<128x32xf32>, vector<32x32xf32>, vector<128x32xf32> -> vector<128x32xf32>
    %11 = vector.broadcast %9 : vector<1x32xf32> to vector<128x32xf32>
    %12 = arith.addf %10, %11 : vector<128x32xf32>
    %cst_11 = arith.constant 0.000000e+00 : f32
    %13 = vector.broadcast %cst_11 : f32 to vector<128x32xf32>
    %14 = arith.maximumf %12, %13 : vector<128x32xf32>
    %c0_12 = arith.constant 0 : index
    %c0_13 = arith.constant 0 : index
    %15 = vector.load %arg6[%c0_12, %c0_13] : memref<8x32xf32, #tpu.memory_space<vmem>>, vector<8x32xf32>
    %c0_14 = arith.constant 0 : index
    %c0_15 = arith.constant 0 : index
    %16 = vector.load %arg7[%c0_14, %c0_15] : memref<1x1xf32, #tpu.memory_space<vmem>>, vector<1x1xf32>
    %cst_16 = arith.constant dense<0.000000e+00> : vector<8x128xf32>
    %17 = tpu.matmul %15, %14, %cst_16 {dimension_numbers = #tpu.dot_dimension_numbers<[1], [1], [0], [0], [0, 0, 1, 0], [], []>} : vector<8x32xf32>, vector<128x32xf32>, vector<8x128xf32> -> vector<8x128xf32>
    %18 = vector.extract_strided_slice %17 {offsets = [0, 0], sizes = [1, 128], strides = [1, 1]} : vector<8x128xf32> to vector<1x128xf32>
    %19 = vector.broadcast %16 : vector<1x1xf32> to vector<1x128xf32>
    %20 = arith.addf %18, %19 : vector<1x128xf32>
    %c0_17 = arith.constant 0 : index
    %c0_18 = arith.constant 0 : index
    %c0_19 = arith.constant 0 : index
    %21 = vector.load %arg8[%c0_17, %c0_18, %c0_19] : memref<1x1x128xf32, #tpu.memory_space<vmem>>, vector<1x1x128xf32>
    %22 = vector.shape_cast %21 : vector<1x1x128xf32> to vector<1x128xf32>
    %23 = vector.shape_cast %20 : vector<1x128xf32> to vector<1x1x128xf32>
    tpu.vector_store %arg8[%c0_17, %c0_18, %c0_19], %23 {strides = array<i32>} : memref<1x1x128xf32, #tpu.memory_space<vmem>>, vector<1x1x128xf32>,
    return
  }
  func.func @transform_0(%arg0: i32) -> (i32, i32) {
    %c0_i32 = arith.constant 0 : i32
    %c0_i32_0 = arith.constant 0 : i32
    return %arg0, %c0_i32 : i32, i32
  }
  func.func @transform_1(%arg0: i32) -> (i32, i32) {
    %c0_i32 = arith.constant 0 : i32
    %c0_i32_0 = arith.constant 0 : i32
    %c0_i32_1 = arith.constant 0 : i32
    return %c0_i32, %c0_i32_0 : i32, i32
  }
  func.func @transform_2(%arg0: i32) -> (i32, i32) {
    %c0_i32 = arith.constant 0 : i32
    %c0_i32_0 = arith.constant 0 : i32
    %c0_i32_1 = arith.constant 0 : i32
    return %c0_i32, %c0_i32_0 : i32, i32
  }
  func.func @transform_3(%arg0: i32) -> (i32, i32) {
    %c0_i32 = arith.constant 0 : i32
    %c0_i32_0 = arith.constant 0 : i32
    %c0_i32_1 = arith.constant 0 : i32
    return %c0_i32, %c0_i32_0 : i32, i32
  }
  func.func @transform_4(%arg0: i32) -> (i32, i32) {
    %c0_i32 = arith.constant 0 : i32
    %c0_i32_0 = arith.constant 0 : i32
    %c0_i32_1 = arith.constant 0 : i32
    return %c0_i32, %c0_i32_0 : i32, i32
  }
  func.func @transform_5(%arg0: i32) -> (i32, i32) {
    %c0_i32 = arith.constant 0 : i32
    %c0_i32_0 = arith.constant 0 : i32
    %c0_i32_1 = arith.constant 0 : i32
    return %c0_i32, %c0_i32_0 : i32, i32
  }
  func.func @transform_6(%arg0: i32) -> (i32, i32) {
    %c0_i32 = arith.constant 0 : i32
    %c0_i32_0 = arith.constant 0 : i32
    %c0_i32_1 = arith.constant 0 : i32
    return %c0_i32, %c0_i32_0 : i32, i32
  }
  func.func @transform_7(%arg0: i32) -> (i32, i32, i32) {
    %c0_i32 = arith.constant 0 : i32
    %c0_i32_0 = arith.constant 0 : i32
    %c0_i32_1 = arith.constant 0 : i32
    return %arg0, %c0_i32, %c0_i32_0 : i32, i32, i32
  }
}

module attributes {stable_mosaic.version = 11 : i64} {
  func.func @kernel(%arg0: i32, %arg1: memref<128x32xf32, #tpu.memory_space<vmem>>, %arg2: memref<32x32xf32, #tpu.memory_space<vmem>>, %arg3: memref<1x32xf32, #tpu.memory_space<vmem>>, %arg4: memref<32x32xf32, #tpu.memory_space<vmem>>, %arg5: memref<1x32xf32, #tpu.memory_space<vmem>>, %arg6: memref<8x32xf32, #tpu.memory_space<vmem>>, %arg7: memref<1x1xf32, #tpu.memory_space<vmem>>, %arg8: memref<1x1x128xf32, #tpu.memory_space<vmem>>) attributes {dimension_semantics = [#tpu.dimension_semantics<parallel>], iteration_bounds = array<i64: 1>, scalar_prefetch = 0 : i64, scratch_operands = 0 : i64, tpu.core_type = #tpu.core_type<tc>, window_params = [{transform_indices = @transform_0, window_bounds = array<i64: 128, 32>}, {pipeline_mode = #tpu.pipeline_mode<synchronous>, transform_indices = @transform_1, window_bounds = array<i64: 32, 32>}, {pipeline_mode = #tpu.pipeline_mode<synchronous>, transform_indices = @transform_2, window_bounds = array<i64: 1, 32>}, {pipeline_mode = #tpu.pipeline_mode<synchronous>, transform_indices = @transform_3, window_bounds = array<i64: 32, 32>}, {pipeline_mode = #tpu.pipeline_mode<synchronous>, transform_indices = @transform_4, window_bounds = array<i64: 1, 32>}, {pipeline_mode = #tpu.pipeline_mode<synchronous>, transform_indices = @transform_5, window_bounds = array<i64: 8, 32>}, {pipeline_mode = #tpu.pipeline_mode<synchronous>, transform_indices = @transform_6, window_bounds = array<i64: 1, 1>}, {transform_indices = @transform_7, window_bounds = array<i64: 1, 1, 128>}]} {
    %c0 = arith.constant 0 : index
    %c0_0 = arith.constant 0 : index
    %0 = vector.load %arg1[%c0, %c0_0] : memref<128x32xf32, #tpu.memory_space<vmem>>, vector<128x32xf32>
    %c0_1 = arith.constant 0 : index
    %c0_2 = arith.constant 0 : index
    %1 = vector.load %arg2[%c0_1, %c0_2] : memref<32x32xf32, #tpu.memory_space<vmem>>, vector<32x32xf32>
    %c0_3 = arith.constant 0 : index
    %c0_4 = arith.constant 0 : index
    %2 = vector.load %arg3[%c0_3, %c0_4] : memref<1x32xf32, #tpu.memory_space<vmem>>, vector<1x32xf32>
    %cst = arith.constant dense<0.000000e+00> : vector<128x32xf32>
    %3 = tpu.matmul %0, %1, %cst {dimension_numbers = #tpu.dot_dimension_numbers<[1], [0], [0], [1], [0, 0, 1, 1], [], []>} : vector<128x32xf32>, vector<32x32xf32>, vector<128x32xf32> -> vector<128x32xf32>
    %4 = vector.broadcast %2 : vector<1x32xf32> to vector<128x32xf32>
    %5 = arith.addf %3, %4 : vector<128x32xf32>
    %cst_5 = arith.constant 0.000000e+00 : f32
    %6 = vector.broadcast %cst_5 : f32 to vector<128x32xf32>
    %7 = arith.maximumf %5, %6 : vector<128x32xf32>
    %c0_6 = arith.constant 0 : index
    %c0_7 = arith.constant 0 : index
    %8 = vector.load %arg4[%c0_6, %c0_7] : memref<32x32xf32, #tpu.memory_space<vmem>>, vector<32x32xf32>
    %c0_8 = arith.constant 0 : index
    %c0_9 = arith.constant 0 : index
    %9 = vector.load %arg5[%c0_8, %c0_9] : memref<1x32xf32, #tpu.memory_space<vmem>>, vector<1x32xf32>
    %cst_10 = arith.constant dense<0.000000e+00> : vector<128x32xf32>
    %10 = tpu.matmul %7, %8, %cst_10 {dimension_numbers = #tpu.dot_dimension_numbers<[1], [0], [0], [1], [0, 0, 1, 1], [], []>} : vector<128x32xf32>, vector<32x32xf32>, vector<128x32xf32> -> vector<128x32xf32>
    %11 = vector.broadcast %9 : vector<1x32xf32> to vector<128x32xf32>
    %12 = arith.addf %10, %11 : vector<128x32xf32>
    %cst_11 = arith.constant 0.000000e+00 : f32
    %13 = vector.broadcast %cst_11 : f32 to vector<128x32xf32>
    %14 = arith.maximumf %12, %13 : vector<128x32xf32>
    %c0_12 = arith.constant 0 : index
    %c0_13 = arith.constant 0 : index
    %15 = vector.load %arg6[%c0_12, %c0_13] : memref<8x32xf32, #tpu.memory_space<vmem>>, vector<8x32xf32>
    %c0_14 = arith.constant 0 : index
    %c0_15 = arith.constant 0 : index
    %16 = vector.load %arg7[%c0_14, %c0_15] : memref<1x1xf32, #tpu.memory_space<vmem>>, vector<1x1xf32>
    %cst_16 = arith.constant dense<0.000000e+00> : vector<8x128xf32>
    %17 = tpu.matmul %15, %14, %cst_16 {dimension_numbers = #tpu.dot_dimension_numbers<[1], [1], [0], [0], [0, 0, 1, 0], [], []>} : vector<8x32xf32>, vector<128x32xf32>, vector<8x128xf32> -> vector<8x128xf32>
    %18 = vector.extract_strided_slice %17 {offsets = [0, 0], sizes = [1, 128], strides = [1, 1]} : vector<8x128xf32> to vector<1x128xf32>
    %19 = vector.broadcast %16 : vector<1x1xf32> to vector<1x128xf32>
    %20 = arith.addf %18, %19 : vector<1x128xf32>
    %c0_17 = arith.constant 0 : index
    %c0_18 = arith.constant 0 : index
    %c0_19 = arith.constant 0 : index
    %21 = vector.load %arg8[%c0_17, %c0_18, %c0_19] : memref<1x1x128xf32, #tpu.memory_space<vmem>>, vector<1x1x128xf32>
    %22 = vector.shape_cast %21 : vector<1x1x128xf32> to vector<1x128xf32>
    %23 = vector.shape_cast %20 : vector<1x128xf32> to vector<1x1x128xf32>
    tpu.vector_store %arg8[%c0_17, %c0_18, %c0_19], %23 {strides = array<i32>} : memref<1x1x128xf32, #tpu.memory_space<vmem>>, vector<1x1x128xf32>,
    return
  }
  func.func @transform_0(%arg0: i32) -> (i32, i32) {
    %c0_i32 = arith.constant 0 : i32
    %c0_i32_0 = arith.constant 0 : i32
    return %arg0, %c0_i32 : i32, i32
  }
  func.func @transform_1(%arg0: i32) -> (i32, i32) {
    %c0_i32 = arith.constant 0 : i32
    %c0_i32_0 = arith.constant 0 : i32
    %c0_i32_1 = arith.constant 0 : i32
    return %c0_i32, %c0_i32_0 : i32, i32
  }
  func.func @transform_2(%arg0: i32) -> (i32, i32) {
    %c0_i32 = arith.constant 0 : i32
    %c0_i32_0 = arith.constant 0 : i32
    %c0_i32_1 = arith.constant 0 : i32
    return %c0_i32, %c0_i32_0 : i32, i32
  }
  func.func @transform_3(%arg0: i32) -> (i32, i32) {
    %c0_i32 = arith.constant 0 : i32
    %c0_i32_0 = arith.constant 0 : i32
    %c0_i32_1 = arith.constant 0 : i32
    return %c0_i32, %c0_i32_0 : i32, i32
  }
  func.func @transform_4(%arg0: i32) -> (i32, i32) {
    %c0_i32 = arith.constant 0 : i32
    %c0_i32_0 = arith.constant 0 : i32
    %c0_i32_1 = arith.constant 0 : i32
    return %c0_i32, %c0_i32_0 : i32, i32
  }
  func.func @transform_5(%arg0: i32) -> (i32, i32) {
    %c0_i32 = arith.constant 0 : i32
    %c0_i32_0 = arith.constant 0 : i32
    %c0_i32_1 = arith.constant 0 : i32
    return %c0_i32, %c0_i32_0 : i32, i32
  }
  func.func @transform_6(%arg0: i32) -> (i32, i32) {
    %c0_i32 = arith.constant 0 : i32
    %c0_i32_0 = arith.constant 0 : i32
    %c0_i32_1 = arith.constant 0 : i32
    return %c0_i32, %c0_i32_0 : i32, i32
  }
  func.func @transform_7(%arg0: i32) -> (i32, i32, i32) {
    %c0_i32 = arith.constant 0 : i32
    %c0_i32_0 = arith.constant 0 : i32
    %c0_i32_1 = arith.constant 0 : i32
    return %arg0, %c0_i32, %c0_i32_0 : i32, i32, i32
  }
}

</mosaic_0001>

<bundles_post_ra>
// kernel: tpu_custom_call.1
= control target key start
LH: loop header
LB: loop body
LE: loop exit
PB: predicated region body
PF: predicated region fallthrough
CT: control target
= control target key end

     0   :  { %s1074_s0 = inlined_call_operand.vmem [shape: f32[128,32], index: 0, kind: input, shape index: {}]   ;;  %s1075_s1 = inlined_call_operand.vmem [shape: f32[32,32], index: 1, kind: input, shape index: {}]   ;;  %s1076_s2 = inlined_call_operand.vmem [shape: f32[1,32], index: 2, kind: input, shape index: {}]   ;;  %s1077_s3 = inlined_call_operand.vmem [shape: f32[32,32], index: 3, kind: input, shape index: {}]   ;;  %s1078_s4 = inlined_call_operand.vmem [shape: f32[1,32], index: 4, kind: input, shape index: {}]   ;;  %s1079_s5 = inlined_call_operand.vmem [shape: f32[8,32], index: 5, kind: input, shape index: {}]   ;;  %s1080_s6 = inlined_call_operand.<no memory space> [shape: f32[1,1], index: 6, kind: input, shape index: {}]   ;;  %s1081_s7 = inlined_call_operand.hbm [shape: f32[1,1,128], index: 7, kind: output, shape index: {}]  }
   0x1   :  { %v12_v0 = vstv %s1080_s6 }
   0x2   :  { %13 = vst [vmem:[#allocation2] sm:$0x1] %v12_v0 }
   0x3   :  { %v48_v1 = vld [vmem:[%s1075_s1 + $0x18] sm:$0xff]  ;;  %v47_v2 = vld [vmem:[%s1075_s1 + $0x10] sm:$0xff]  ;;  %vm56_vm0 = vcmask 261120   ;;  %v29_v3 = vld [vmem:[%s1074_s0] sm:$0xff] }
   0x4   :  { %742 = vmatprep.subr.mxu1 %v48_v1  ;;  %v46_v4 = vld [vmem:[%s1075_s1 + $0x8] sm:$0xff]  ;;  %750 = vmatprep.mubr.msk.f32.mxu1 %vm56_vm0, %v29_v3  ;;  %v45_v5 = vld [vmem:[%s1075_s1] sm:$0xff]  ;;  %v269_v7 = vld [vmem:[%s1077_s3 + $0x18] sm:$0xff] }
   0x5   :  { %743 = vmatpush3.msra.mxu1 %v48_v1  ;;  %v30_v6 = vld [vmem:[%s1074_s0 + $0x8] sm:$0xff]  ;;  %v31_v8 = vld [vmem:[%s1074_s0 + $0x10] sm:$0xff] }
   0x6   :  { %744 = vmatprep.subr.mxu1 %v47_v2  ;;  %v268_v9 = vld [vmem:[%s1077_s3 + $0x10] sm:$0xff] }
   0x7   :  { %745 = vmatpush3.msra.mxu1 %v47_v2 }
   0x8   :  { %746 = vmatprep.subr.mxu1 %v46_v4 }
   0x9   :  { %747 = vmatpush3.msra.mxu1 %v46_v4 }
   0xa   :  { %748 = vmatprep.subr.mxu1 %v45_v5 }
   0xb   :  { %749 = vmatpush3.msra.mxu1 %v45_v5 }
   0xc   :  { %14 = vsyncpa [#allocation4], 0  ;;  %751 = vmatmul.mubr.msk.f32.vlgmr.msra.gmra.mxu1 %vm56_vm0, %v30_v6  ;;  %774 = vmatprep.subr.mxu1 %v269_v7  ;;  %v32_v10 = vld [vmem:[%s1074_s0 + $0x18] sm:$0xff]  ;;  %v267_v11 = vld [vmem:[%s1077_s3 + $0x8] sm:$0xff]  ;;  %vm869_vm1 = vmmov 0   ;;  %s871_s26 = smov [#allocation3]  }
   0xd   :  { %753 = vmatprep.mubr.msk.f32.mxu1 %vm56_vm0, %v31_v8  ;;  %775 = vmatpush3.msra.mxu1 %v269_v7  ;;  %v33_v12 = vld [vmem:[%s1074_s0 + $0x20] sm:$0xff]  ;;  %v34_v14 = vld [vmem:[%s1074_s0 + $0x28] sm:$0xff]  ;;  %v35_v15 = vld [vmem:[%s1074_s0 + $0x30] sm:$0xff]  ;;  %s626_s27 = sshll.u32 %s871_s26, 4  ;;  %s627_s27 = int_to_ptr.vmem [resolvable:$true] %s626_s27 }
   0xe   :  { %776 = vmatprep.subr.mxu1 %v268_v9  ;;  %v266_v13 = vld [vmem:[%s1077_s3] sm:$0xff]  ;;  %v36_v16 = vld [vmem:[%s1074_s0 + $0x38] sm:$0xff]  ;;  %v38_v18 = vld [vmem:[%s1074_s0 + $0x48] sm:$0xff]  ;;  %s846_s28 = scalar_lea.vmem %s627_s27, 16  ;;  %s850_s29 = scalar_lea.vmem %s627_s27, 32 }
   0xf   :  { %777 = vmatpush3.msra.mxu1 %v268_v9  ;;  %v37_v17 = vld [vmem:[%s1074_s0 + $0x40] sm:$0xff]  ;;  %v39_v19 = vld [vmem:[%s1074_s0 + $0x50] sm:$0xff]  ;;  %v40_v20 = vld [vmem:[%s1074_s0 + $0x58] sm:$0xff]  ;;  %p847_p0 = scmp.ne.s32.totalorder %s627_s27, %s846_s28  ;;  %p851_p1 = scmp.lt.s32.totalorder %s627_s27, %s627_s27 }
  0x10   :  { %754 = vmatmul.mubr.msk.f32.gmra.mxu1 %vm56_vm0, %v32_v10  ;;  %778 = vmatprep.subr.mxu1 %v267_v11  ;;  %v41_v21 = vld [vmem:[%s1074_s0 + $0x60] sm:$0xff]  ;;  %v42_v22 = vld [vmem:[%s1074_s0 + $0x68] sm:$0xff]  ;;  %v43_v23 = vld [vmem:[%s1074_s0 + $0x70] sm:$0xff]  ;;  %v868_v10 = vmov 0.0   ;;  %p852_p2 = scmp.lt.s32.totalorder %s850_s29, %s846_s28 }
  0x11   :  { %756 = vmatprep.mubr.msk.f32.mxu1 %vm56_vm0, %v33_v12  ;;  %779 = vmatpush3.msra.mxu1 %v267_v11  ;;  %v44_v24 = vld [vmem:[%s1074_s0 + $0x78] sm:$0xff]  ;;  %v634_v25 = vld [vmem:[%s1076_s2] ss:$0 sm:$0xff]  ;;  %v870_v12 = vmov 0  }
  0x12   :  { %780 = vmatprep.subr.mxu1 %v266_v13  ;;  %806 = vmatprep.subr.mxu0 %v868_v10  ;;  %v487_v11 = vld [vmem:[#allocation2] sm:$0x1]  ;;  %p853_p3 = por %p852_p2, %p851_p1 }
  0x13   :  { %781 = vmatpush3.msra.mxu1 %v266_v13  ;;  %838 = vmatprep.mubr.msk.f32.mxu0 %vm869_vm1, %v868_v10 }
  0x14   :  { %757 = vmatmul.mubr.msk.f32.gmra.mxu1 %vm56_vm0, %v34_v14  ;;  %845 = vset.pattern.permute.xlu0 %v870_v12  ;;  %p854_p4 = pnand %p853_p3, %p847_p0 }
  0x15   :  { %759 = vmatprep.mubr.msk.f32.mxu1 %vm56_vm0, %v35_v15  ;;  %611 = vperm.xlu0 %845, %v487_v11  }
  0x18   :  { %760 = vmatmul.mubr.msk.f32.gmra.mxu1 %vm56_vm0, %v36_v16 }
  0x19   :  { %762 = vmatprep.mubr.msk.f32.mxu1 %vm56_vm0, %v37_v17 }
  0x1c   :  { %763 = vmatmul.mubr.msk.f32.gmra.mxu1 %vm56_vm0, %v38_v18 }
  0x1d   :  { %765 = vmatprep.mubr.msk.f32.mxu1 %vm56_vm0, %v39_v19 }
  0x20   :  { %766 = vmatmul.mubr.msk.f32.gmra.mxu1 %vm56_vm0, %v40_v20 }
  0x21   :  { %768 = vmatprep.mubr.msk.f32.mxu1 %vm56_vm0, %v41_v21 }
  0x24   :  { %769 = vmatmul.mubr.msk.f32.gmra.mxu1 %vm56_vm0, %v42_v22 }
  0x25   :  { %771 = vmatprep.mubr.msk.f32.mxu1 %vm56_vm0, %v43_v23 }
  0x28   :  { %772 = vmatmul.mubr.msk.f32.gmra.mxu1 %vm56_vm0, %v44_v24 }
  0xcc   :  { %v752_v26 = vpop.f32.mrf.mxu1 }
  0xcd   :  { %v177_v27 = vadd.f32 %v752_v26, %v634_v25 }
  0xce   :  { %v171_v28 = vpop.f32.mrf.mxu1 }
  0xcf   :  { %v172_v29 = vadd.f32 %v634_v25, %v171_v28  ;;  %v251_v32 = vmax.f32 %v177_v27, 0.0  ;;  %v651_v27 = vld [vmem:[%s1078_s4] ss:$0 sm:$0xff] }
  0xd0   :  { %v755_v30 = vpop.f32.mrf.mxu1 }
  0xd1   :  { %v250_v31 = vmax.f32 %v172_v29, 0.0  ;;  %v187_v33 = vadd.f32 %v755_v30, %v634_v25 }
  0xd2   :  { %v181_v34 = vpop.f32.mrf.mxu1 }
  0xd3   :  { %v182_v35 = vadd.f32 %v634_v25, %v181_v34  ;;  %782 = vmatprep.mubr.msk.f32.mxu1 %vm56_vm0, %v250_v31  ;;  %v253_v38 = vmax.f32 %v187_v33, 0.0 }
  0xd4   :  { %v758_v36 = vpop.f32.mrf.mxu1  ;;  %783 = vmatmul.mubr.msk.f32.vlgmr.msra.gmra.mxu1 %vm56_vm0, %v251_v32 }
  0xd5   :  { %v252_v37 = vmax.f32 %v182_v35, 0.0  ;;  %v197_v39 = vadd.f32 %v758_v36, %v634_v25 }
  0xd6   :  { %v191_v40 = vpop.f32.mrf.mxu1 }
  0xd7   :  { %v192_v41 = vadd.f32 %v634_v25, %v191_v40  ;;  %785 = vmatprep.mubr.msk.f32.mxu1 %vm56_vm0, %v252_v37  ;;  %v255_v44 = vmax.f32 %v197_v39, 0.0 }
  0xd8   :  { %v761_v42 = vpop.f32.mrf.mxu1  ;;  %786 = vmatmul.mubr.msk.f32.gmra.mxu1 %vm56_vm0, %v253_v38 }
  0xd9   :  { %v254_v43 = vmax.f32 %v192_v41, 0.0  ;;  %v207_v45 = vadd.f32 %v761_v42, %v634_v25 }
  0xda   :  { %v201_v46 = vpop.f32.mrf.mxu1 }
  0xdb   :  { %v202_v47 = vadd.f32 %v634_v25, %v201_v46  ;;  %788 = vmatprep.mubr.msk.f32.mxu1 %vm56_vm0, %v254_v43  ;;  %v257_v50 = vmax.f32 %v207_v45, 0.0 }
  0xdc   :  { %v764_v48 = vpop.f32.mrf.mxu1  ;;  %789 = vmatmul.mubr.msk.f32.gmra.mxu1 %vm56_vm0, %v255_v44 }
  0xdd   :  { %v256_v49 = vmax.f32 %v202_v47, 0.0  ;;  %v217_v51 = vadd.f32 %v764_v48, %v634_v25 }
  0xde   :  { %v211_v52 = vpop.f32.mrf.mxu1 }
  0xdf   :  { %v212_v53 = vadd.f32 %v634_v25, %v211_v52  ;;  %791 = vmatprep.mubr.msk.f32.mxu1 %vm56_vm0, %v256_v49  ;;  %v259_v56 = vmax.f32 %v217_v51, 0.0 }
  0xe0   :  { %v767_v54 = vpop.f32.mrf.mxu1  ;;  %792 = vmatmul.mubr.msk.f32.gmra.mxu1 %vm56_vm0, %v257_v50 }
  0xe1   :  { %v258_v55 = vmax.f32 %v212_v53, 0.0  ;;  %v227_v57 = vadd.f32 %v767_v54, %v634_v25 }
  0xe2   :  { %v221_v58 = vpop.f32.mrf.mxu1 }
  0xe3   :  { %v222_v59 = vadd.f32 %v634_v25, %v221_v58  ;;  %794 = vmatprep.mubr.msk.f32.mxu1 %vm56_vm0, %v258_v55  ;;  %v261_v62 = vmax.f32 %v227_v57, 0.0 }
  0xe4   :  { %v770_v60 = vpop.f32.mrf.mxu1  ;;  %795 = vmatmul.mubr.msk.f32.gmra.mxu1 %vm56_vm0, %v259_v56 }
  0xe5   :  { %v260_v61 = vmax.f32 %v222_v59, 0.0  ;;  %v237_v63 = vadd.f32 %v770_v60, %v634_v25 }
  0xe6   :  { %v231_v0 = vpop.f32.mrf.mxu1 }
  0xe7   :  { %v232_v1 = vadd.f32 %v634_v25, %v231_v0  ;;  %797 = vmatprep.mubr.msk.f32.mxu1 %vm56_vm0, %v260_v61  ;;  %v263_v4 = vmax.f32 %v237_v63, 0.0  ;;  %v614_v63 = vlaneseq }
  0xe8   :  { %v773_v2 = vpop.f32.mrf.mxu1  ;;  %798 = vmatmul.mubr.msk.f32.gmra.mxu1 %vm56_vm0, %v261_v62  ;;  %v486_v62 = vld [vmem:[%s1079_s5] sm:$0xff] }
  0xe9   :  { %v262_v3 = vmax.f32 %v232_v1, 0.0  ;;  %v247_v5 = vadd.f32 %v773_v2, %v634_v25  ;;  %v615_v0 = vshrl.u32 %v614_v63, 7  ;;  %v612_v2 = vpop.permute.xlu0 %611 }
  0xea   :  { %v241_v6 = vpop.f32.mrf.mxu1 }
  0xeb   :  { %v242_v7 = vadd.f32 %v634_v25, %v241_v6  ;;  %800 = vmatprep.mubr.msk.f32.mxu1 %vm56_vm0, %v262_v3  ;;  %v265_v9 = vmax.f32 %v247_v5, 0.0  ;;  %v616_v1 = vsub.s32 0, %v615_v0 }
  0xec   :  { %801 = vmatmul.mubr.msk.f32.gmra.mxu1 %vm56_vm0, %v263_v4 }
  0xed   :  { %v264_v8 = vmax.f32 %v242_v7, 0.0  ;;  %v617_v3 = vrot.slane %v612_v2, %v616_v1 }
  0xef   :  { %803 = vmatprep.mubr.msk.f32.mxu1 %vm56_vm0, %v264_v8 }
  0xf0   :  { %804 = vmatmul.mubr.msk.f32.gmra.mxu1 %vm56_vm0, %v265_v9 }
 0x194   :  { %v1024_v13 = vpop.f32.mrf.mxu1 }
 0x195   :  { %v397_v57 = vadd.f32 %v1024_v13, %v651_v27 }
 0x196   :  { %v1026_v14 = vpop.f32.mrf.mxu1 }
 0x197   :  { %v471_v59 = vmax.f32 %v397_v57, 0.0  ;;  %v392_v60 = vadd.f32 %v651_v27, %v1026_v14 }
 0x198   :  { %v787_v15 = vpop.f32.mrf.mxu1 }
 0x199   :  { %v407_v53 = vadd.f32 %v787_v15, %v651_v27  ;;  %v470_v61 = vmax.f32 %v392_v60, 0.0 }
 0x19a   :  { %v1028_v16 = vpop.f32.mrf.mxu1 }
 0x19b   :  { %v473_v55 = vmax.f32 %v407_v53, 0.0  ;;  %v402_v56 = vadd.f32 %v651_v27, %v1028_v16 }
 0x19c   :  { %v790_v17 = vpop.f32.mrf.mxu1 }
 0x19d   :  { %v417_v49 = vadd.f32 %v790_v17, %v651_v27  ;;  %v472_v58 = vmax.f32 %v402_v56, 0.0 }
 0x19e   :  { %v411_v18 = vpop.f32.mrf.mxu1 }
 0x19f   :  { %v475_v51 = vmax.f32 %v417_v49, 0.0  ;;  %v412_v52 = vadd.f32 %v651_v27, %v411_v18 }
 0x1a0   :  { %v793_v19 = vpop.f32.mrf.mxu1 }
 0x1a1   :  { %v427_v45 = vadd.f32 %v793_v19, %v651_v27  ;;  %v474_v54 = vmax.f32 %v412_v52, 0.0 }
 0x1a2   :  { %v421_v20 = vpop.f32.mrf.mxu1 }
 0x1a3   :  { %v477_v47 = vmax.f32 %v427_v45, 0.0  ;;  %v422_v48 = vadd.f32 %v651_v27, %v421_v20 }
 0x1a4   :  { %v796_v21 = vpop.f32.mrf.mxu1 }
 0x1a5   :  { %v437_v41 = vadd.f32 %v796_v21, %v651_v27  ;;  %v476_v50 = vmax.f32 %v422_v48, 0.0 }
 0x1a6   :  { %v431_v22 = vpop.f32.mrf.mxu1 }
 0x1a7   :  { %v479_v43 = vmax.f32 %v437_v41, 0.0  ;;  %v432_v44 = vadd.f32 %v651_v27, %v431_v22 }
 0x1a8   :  { %v799_v23 = vpop.f32.mrf.mxu1 }
 0x1a9   :  { %v447_v37 = vadd.f32 %v799_v23, %v651_v27  ;;  %v478_v46 = vmax.f32 %v432_v44, 0.0 }
 0x1aa   :  { %v441_v24 = vpop.f32.mrf.mxu1 }
 0x1ab   :  { %v481_v39 = vmax.f32 %v447_v37, 0.0  ;;  %v442_v40 = vadd.f32 %v651_v27, %v441_v24 }
 0x1ac   :  { %v802_v25 = vpop.f32.mrf.mxu1 }
 0x1ad   :  { %v457_v33 = vadd.f32 %v802_v25, %v651_v27  ;;  %v480_v42 = vmax.f32 %v442_v40, 0.0 }
 0x1ae   :  { %v451_v26 = vpop.f32.mrf.mxu1 }
 0x1af   :  { %v483_v35 = vmax.f32 %v457_v33, 0.0  ;;  %v452_v36 = vadd.f32 %v651_v27, %v451_v26 }
 0x1b0   :  { %v805_v28 = vpop.f32.mrf.mxu1 }
 0x1b1   :  { %v467_v29 = vadd.f32 %v805_v28, %v651_v27  ;;  %v482_v38 = vmax.f32 %v452_v36, 0.0 }
 0x1b2   :  { %v461_v30 = vpop.f32.mrf.mxu1 }
 0x1b3   :  { %v485_v31 = vmax.f32 %v467_v29, 0.0  ;;  %v462_v32 = vadd.f32 %v651_v27, %v461_v30 }
 0x1b5   :  { %807 = vmatpush3.xpose.msk.msra.mxu0 %vm56_vm0, %v485_v31  ;;  %v484_v34 = vmax.f32 %v462_v32, 0.0 }
 0x1b6   :  { %808 = vmatprep.subr.mxu0 %v868_v10 }
 0x1b9   :  { %809 = vmatpush3.xpose.msk.msra.mxu0 %vm56_vm0, %v484_v34 }
 0x1ba   :  { %810 = vmatprep.subr.mxu0 %v868_v10 }
 0x1bd   :  { %811 = vmatpush3.xpose.msk.msra.mxu0 %vm56_vm0, %v483_v35 }
 0x1be   :  { %812 = vmatprep.subr.mxu0 %v868_v10 }
 0x1c1   :  { %813 = vmatpush3.xpose.msk.msra.mxu0 %vm56_vm0, %v482_v38 }
 0x1c2   :  { %814 = vmatprep.subr.mxu0 %v868_v10 }
 0x1c5   :  { %815 = vmatpush3.xpose.msk.msra.mxu0 %vm56_vm0, %v481_v39 }
 0x1c6   :  { %816 = vmatprep.subr.mxu0 %v868_v10 }
 0x1c9   :  { %817 = vmatpush3.xpose.msk.msra.mxu0 %vm56_vm0, %v480_v42 }
 0x1ca   :  { %818 = vmatprep.subr.mxu0 %v868_v10 }
 0x1cd   :  { %819 = vmatpush3.xpose.msk.msra.mxu0 %vm56_vm0, %v479_v43 }
 0x1ce   :  { %820 = vmatprep.subr.mxu0 %v868_v10 }
 0x1d1   :  { %821 = vmatpush3.xpose.msk.msra.mxu0 %vm56_vm0, %v478_v46 }
 0x1d2   :  { %822 = vmatprep.subr.mxu0 %v868_v10 }
 0x1d5   :  { %823 = vmatpush3.xpose.msk.msra.mxu0 %vm56_vm0, %v477_v47 }
 0x1d6   :  { %824 = vmatprep.subr.mxu0 %v868_v10 }
 0x1d9   :  { %825 = vmatpush3.xpose.msk.msra.mxu0 %vm56_vm0, %v476_v50 }
 0x1da   :  { %826 = vmatprep.subr.mxu0 %v868_v10 }
 0x1dd   :  { %827 = vmatpush3.xpose.msk.msra.mxu0 %vm56_vm0, %v475_v51 }
 0x1de   :  { %828 = vmatprep.subr.mxu0 %v868_v10 }
 0x1e1   :  { %829 = vmatpush3.xpose.msk.msra.mxu0 %vm56_vm0, %v474_v54 }
 0x1e2   :  { %830 = vmatprep.subr.mxu0 %v868_v10 }
 0x1e5   :  { %831 = vmatpush3.xpose.msk.msra.mxu0 %vm56_vm0, %v473_v55 }
 0x1e6   :  { %832 = vmatprep.subr.mxu0 %v868_v10 }
 0x1e9   :  { %833 = vmatpush3.xpose.msk.msra.mxu0 %vm56_vm0, %v472_v58 }
 0x1ea   :  { %834 = vmatprep.subr.mxu0 %v868_v10 }
 0x1ed   :  { %835 = vmatpush3.xpose.msk.msra.mxu0 %vm56_vm0, %v471_v59 }
 0x1ee   :  { %836 = vmatprep.subr.mxu0 %v868_v10 }
 0x1f1   :  { %837 = vmatpush3.xpose.msk.msra.mxu0 %vm56_vm0, %v470_v61 }
 0x1f4   :  { %839 = vmatmul.mubr.msk.f32.vlgmr.msra.gmra.mxu0 %vm56_vm0, %v486_v62 }
 0x2b4   :  { %v605_v4 = vpop.f32.mrf.mxu0 }
 0x2b5   :  { %v618_v5 = vadd.f32 %v617_v3, %v605_v4 }
 0x2b6   :  { %v840_v6 = vpop.f32.mrf.mxu0 }
 0x2b7   :  { %619 = vst [vmem:[#allocation3] sm:$0x1] %v618_v5 }
 0x2b8   :  { %857 = shalt.err (!%p854_p4)
}
 0x2b9   :  { %629 = dma.vmem_to_hbm [thread:$0]  %s627_s27, 16, %s1081_s7, [#allocation4]  }
 0x2ba   :  { %866 = dma.done.wait [#allocation4], 16  }
 0x2bb   :  { %867 = vsyncadd [#allocation4], 4294967280 }
 0x2bc   :  { %633 = vsyncpa [#allocation4], 1 }

// kernel: tpu_custom_call.1
= control target key start
LH: loop header
LB: loop body
LE: loop exit
PB: predicated region body
PF: predicated region fallthrough
CT: control target
= control target key end

     0   :  { %s1074_s0 = inlined_call_operand.vmem [shape: f32[128,32], index: 0, kind: input, shape index: {}]   ;;  %s1075_s1 = inlined_call_operand.vmem [shape: f32[32,32], index: 1, kind: input, shape index: {}]   ;;  %s1076_s2 = inlined_call_operand.vmem [shape: f32[1,32], index: 2, kind: input, shape index: {}]   ;;  %s1077_s3 = inlined_call_operand.vmem [shape: f32[32,32], index: 3, kind: input, shape index: {}]   ;;  %s1078_s4 = inlined_call_operand.vmem [shape: f32[1,32], index: 4, kind: input, shape index: {}]   ;;  %s1079_s5 = inlined_call_operand.vmem [shape: f32[8,32], index: 5, kind: input, shape index: {}]   ;;  %s1080_s6 = inlined_call_operand.<no memory space> [shape: f32[1,1], index: 6, kind: input, shape index: {}]   ;;  %s1081_s7 = inlined_call_operand.hbm [shape: f32[1,1,128], index: 7, kind: output, shape index: {}]  }
   0x1   :  { %v12_v0 = vstv %s1080_s6 }
   0x2   :  { %13 = vst [vmem:[#allocation2] sm:$0x1] %v12_v0 }
   0x3   :  { %v48_v1 = vld [vmem:[%s1075_s1 + $0x18] sm:$0xff]  ;;  %v47_v2 = vld [vmem:[%s1075_s1 + $0x10] sm:$0xff]  ;;  %vm56_vm0 = vcmask 261120   ;;  %v29_v3 = vld [vmem:[%s1074_s0] sm:$0xff] }
   0x4   :  { %742 = vmatprep.subr.mxu1 %v48_v1  ;;  %v46_v4 = vld [vmem:[%s1075_s1 + $0x8] sm:$0xff]  ;;  %750 = vmatprep.mubr.msk.f32.mxu1 %vm56_vm0, %v29_v3  ;;  %v45_v5 = vld [vmem:[%s1075_s1] sm:$0xff]  ;;  %v269_v7 = vld [vmem:[%s1077_s3 + $0x18] sm:$0xff] }
   0x5   :  { %743 = vmatpush3.msra.mxu1 %v48_v1  ;;  %v30_v6 = vld [vmem:[%s1074_s0 + $0x8] sm:$0xff]  ;;  %v31_v8 = vld [vmem:[%s1074_s0 + $0x10] sm:$0xff] }
   0x6   :  { %744 = vmatprep.subr.mxu1 %v47_v2  ;;  %v268_v9 = vld [vmem:[%s1077_s3 + $0x10] sm:$0xff] }
   0x7   :  { %745 = vmatpush3.msra.mxu1 %v47_v2 }
   0x8   :  { %746 = vmatprep.subr.mxu1 %v46_v4 }
   0x9   :  { %747 = vmatpush3.msra.mxu1 %v46_v4 }
   0xa   :  { %748 = vmatprep.subr.mxu1 %v45_v5 }
   0xb   :  { %749 = vmatpush3.msra.mxu1 %v45_v5 }
   0xc   :  { %14 = vsyncpa [#allocation4], 0  ;;  %751 = vmatmul.mubr.msk.f32.vlgmr.msra.gmra.mxu1 %vm56_vm0, %v30_v6  ;;  %774 = vmatprep.subr.mxu1 %v269_v7  ;;  %v32_v10 = vld [vmem:[%s1074_s0 + $0x18] sm:$0xff]  ;;  %v267_v11 = vld [vmem:[%s1077_s3 + $0x8] sm:$0xff]  ;;  %vm869_vm1 = vmmov 0   ;;  %s871_s26 = smov [#allocation3]  }
   0xd   :  { %753 = vmatprep.mubr.msk.f32.mxu1 %vm56_vm0, %v31_v8  ;;  %775 = vmatpush3.msra.mxu1 %v269_v7  ;;  %v33_v12 = vld [vmem:[%s1074_s0 + $0x20] sm:$0xff]  ;;  %v34_v14 = vld [vmem:[%s1074_s0 + $0x28] sm:$0xff]  ;;  %v35_v15 = vld [vmem:[%s1074_s0 + $0x30] sm:$0xff]  ;;  %s626_s27 = sshll.u32 %s871_s26, 4  ;;  %s627_s27 = int_to_ptr.vmem [resolvable:$true] %s626_s27 }
   0xe   :  { %776 = vmatprep.subr.mxu1 %v268_v9  ;;  %v266_v13 = vld [vmem:[%s1077_s3] sm:$0xff]  ;;  %v36_v16 = vld [vmem:[%s1074_s0 + $0x38] sm:$0xff]  ;;  %v38_v18 = vld [vmem:[%s1074_s0 + $0x48] sm:$0xff]  ;;  %s846_s28 = scalar_lea.vmem %s627_s27, 16  ;;  %s850_s29 = scalar_lea.vmem %s627_s27, 32 }
   0xf   :  { %777 = vmatpush3.msra.mxu1 %v268_v9  ;;  %v37_v17 = vld [vmem:[%s1074_s0 + $0x40] sm:$0xff]  ;;  %v39_v19 = vld [vmem:[%s1074_s0 + $0x50] sm:$0xff]  ;;  %v40_v20 = vld [vmem:[%s1074_s0 + $0x58] sm:$0xff]  ;;  %p847_p0 = scmp.ne.s32.totalorder %s627_s27, %s846_s28  ;;  %p851_p1 = scmp.lt.s32.totalorder %s627_s27, %s627_s27 }
  0x10   :  { %754 = vmatmul.mubr.msk.f32.gmra.mxu1 %vm56_vm0, %v32_v10  ;;  %778 = vmatprep.subr.mxu1 %v267_v11  ;;  %v41_v21 = vld [vmem:[%s1074_s0 + $0x60] sm:$0xff]  ;;  %v42_v22 = vld [vmem:[%s1074_s0 + $0x68] sm:$0xff]  ;;  %v43_v23 = vld [vmem:[%s1074_s0 + $0x70] sm:$0xff]  ;;  %v868_v10 = vmov 0.0   ;;  %p852_p2 = scmp.lt.s32.totalorder %s850_s29, %s846_s28 }
  0x11   :  { %756 = vmatprep.mubr.msk.f32.mxu1 %vm56_vm0, %v33_v12  ;;  %779 = vmatpush3.msra.mxu1 %v267_v11  ;;  %v44_v24 = vld [vmem:[%s1074_s0 + $0x78] sm:$0xff]  ;;  %v634_v25 = vld [vmem:[%s1076_s2] ss:$0 sm:$0xff]  ;;  %v870_v12 = vmov 0  }
  0x12   :  { %780 = vmatprep.subr.mxu1 %v266_v13  ;;  %806 = vmatprep.subr.mxu0 %v868_v10  ;;  %v487_v11 = vld [vmem:[#allocation2] sm:$0x1]  ;;  %p853_p3 = por %p852_p2, %p851_p1 }
  0x13   :  { %781 = vmatpush3.msra.mxu1 %v266_v13  ;;  %838 = vmatprep.mubr.msk.f32.mxu0 %vm869_vm1, %v868_v10 }
  0x14   :  { %757 = vmatmul.mubr.msk.f32.gmra.mxu1 %vm56_vm0, %v34_v14  ;;  %845 = vset.pattern.permute.xlu0 %v870_v12  ;;  %p854_p4 = pnand %p853_p3, %p847_p0 }
  0x15   :  { %759 = vmatprep.mubr.msk.f32.mxu1 %vm56_vm0, %v35_v15  ;;  %611 = vperm.xlu0 %845, %v487_v11  }
  0x18   :  { %760 = vmatmul.mubr.msk.f32.gmra.mxu1 %vm56_vm0, %v36_v16 }
  0x19   :  { %762 = vmatprep.mubr.msk.f32.mxu1 %vm56_vm0, %v37_v17 }
  0x1c   :  { %763 = vmatmul.mubr.msk.f32.gmra.mxu1 %vm56_vm0, %v38_v18 }
  0x1d   :  { %765 = vmatprep.mubr.msk.f32.mxu1 %vm56_vm0, %v39_v19 }
  0x20   :  { %766 = vmatmul.mubr.msk.f32.gmra.mxu1 %vm56_vm0, %v40_v20 }
  0x21   :  { %768 = vmatprep.mubr.msk.f32.mxu1 %vm56_vm0, %v41_v21 }
  0x24   :  { %769 = vmatmul.mubr.msk.f32.gmra.mxu1 %vm56_vm0, %v42_v22 }
  0x25   :  { %771 = vmatprep.mubr.msk.f32.mxu1 %vm56_vm0, %v43_v23 }
  0x28   :  { %772 = vmatmul.mubr.msk.f32.gmra.mxu1 %vm56_vm0, %v44_v24 }
  0xcc   :  { %v752_v26 = vpop.f32.mrf.mxu1 }
  0xcd   :  { %v177_v27 = vadd.f32 %v752_v26, %v634_v25 }
  0xce   :  { %v171_v28 = vpop.f32.mrf.mxu1 }
  0xcf   :  { %v172_v29 = vadd.f32 %v634_v25, %v171_v28  ;;  %v251_v32 = vmax.f32 %v177_v27, 0.0  ;;  %v651_v27 = vld [vmem:[%s1078_s4] ss:$0 sm:$0xff] }
  0xd0   :  { %v755_v30 = vpop.f32.mrf.mxu1 }
  0xd1   :  { %v250_v31 = vmax.f32 %v172_v29, 0.0  ;;  %v187_v33 = vadd.f32 %v755_v30, %v634_v25 }
  0xd2   :  { %v181_v34 = vpop.f32.mrf.mxu1 }
  0xd3   :  { %v182_v35 = vadd.f32 %v634_v25, %v181_v34  ;;  %782 = vmatprep.mubr.msk.f32.mxu1 %vm56_vm0, %v250_v31  ;;  %v253_v38 = vmax.f32 %v187_v33, 0.0 }
  0xd4   :  { %v758_v36 = vpop.f32.mrf.mxu1  ;;  %783 = vmatmul.mubr.msk.f32.vlgmr.msra.gmra.mxu1 %vm56_vm0, %v251_v32 }
  0xd5   :  { %v252_v37 = vmax.f32 %v182_v35, 0.0  ;;  %v197_v39 = vadd.f32 %v758_v36, %v634_v25 }
  0xd6   :  { %v191_v40 = vpop.f32.mrf.mxu1 }
  0xd7   :  { %v192_v41 = vadd.f32 %v634_v25, %v191_v40  ;;  %785 = vmatprep.mubr.msk.f32.mxu1 %vm56_vm0, %v252_v37  ;;  %v255_v44 = vmax.f32 %v197_v39, 0.0 }
  0xd8   :  { %v761_v42 = vpop.f32.mrf.mxu1  ;;  %786 = vmatmul.mubr.msk.f32.gmra.mxu1 %vm56_vm0, %v253_v38 }
  0xd9   :  { %v254_v43 = vmax.f32 %v192_v41, 0.0  ;;  %v207_v45 = vadd.f32 %v761_v42, %v634_v25 }
  0xda   :  { %v201_v46 = vpop.f32.mrf.mxu1 }
  0xdb   :  { %v202_v47 = vadd.f32 %v634_v25, %v201_v46  ;;  %788 = vmatprep.mubr.msk.f32.mxu1 %vm56_vm0, %v254_v43  ;;  %v257_v50 = vmax.f32 %v207_v45, 0.0 }
  0xdc   :  { %v764_v48 = vpop.f32.mrf.mxu1  ;;  %789 = vmatmul.mubr.msk.f32.gmra.mxu1 %vm56_vm0, %v255_v44 }
  0xdd   :  { %v256_v49 = vmax.f32 %v202_v47, 0.0  ;;  %v217_v51 = vadd.f32 %v764_v48, %v634_v25 }
  0xde   :  { %v211_v52 = vpop.f32.mrf.mxu1 }
  0xdf   :  { %v212_v53 = vadd.f32 %v634_v25, %v211_v52  ;;  %791 = vmatprep.mubr.msk.f32.mxu1 %vm56_vm0, %v256_v49  ;;  %v259_v56 = vmax.f32 %v217_v51, 0.0 }
  0xe0   :  { %v767_v54 = vpop.f32.mrf.mxu1  ;;  %792 = vmatmul.mubr.msk.f32.gmra.mxu1 %vm56_vm0, %v257_v50 }
  0xe1   :  { %v258_v55 = vmax.f32 %v212_v53, 0.0  ;;  %v227_v57 = vadd.f32 %v767_v54, %v634_v25 }
  0xe2   :  { %v221_v58 = vpop.f32.mrf.mxu1 }
  0xe3   :  { %v222_v59 = vadd.f32 %v634_v25, %v221_v58  ;;  %794 = vmatprep.mubr.msk.f32.mxu1 %vm56_vm0, %v258_v55  ;;  %v261_v62 = vmax.f32 %v227_v57, 0.0 }
  0xe4   :  { %v770_v60 = vpop.f32.mrf.mxu1  ;;  %795 = vmatmul.mubr.msk.f32.gmra.mxu1 %vm56_vm0, %v259_v56 }
  0xe5   :  { %v260_v61 = vmax.f32 %v222_v59, 0.0  ;;  %v237_v63 = vadd.f32 %v770_v60, %v634_v25 }
  0xe6   :  { %v231_v0 = vpop.f32.mrf.mxu1 }
  0xe7   :  { %v232_v1 = vadd.f32 %v634_v25, %v231_v0  ;;  %797 = vmatprep.mubr.msk.f32.mxu1 %vm56_vm0, %v260_v61  ;;  %v263_v4 = vmax.f32 %v237_v63, 0.0  ;;  %v614_v63 = vlaneseq }
  0xe8   :  { %v773_v2 = vpop.f32.mrf.mxu1  ;;  %798 = vmatmul.mubr.msk.f32.gmra.mxu1 %vm56_vm0, %v261_v62  ;;  %v486_v62 = vld [vmem:[%s1079_s5] sm:$0xff] }
  0xe9   :  { %v262_v3 = vmax.f32 %v232_v1, 0.0  ;;  %v247_v5 = vadd.f32 %v773_v2, %v634_v25  ;;  %v615_v0 = vshrl.u32 %v614_v63, 7  ;;  %v612_v2 = vpop.permute.xlu0 %611 }
  0xea   :  { %v241_v6 = vpop.f32.mrf.mxu1 }
  0xeb   :  { %v242_v7 = vadd.f32 %v634_v25, %v241_v6  ;;  %800 = vmatprep.mubr.msk.f32.mxu1 %vm56_vm0, %v262_v3  ;;  %v265_v9 = vmax.f32 %v247_v5, 0.0  ;;  %v616_v1 = vsub.s32 0, %v615_v0 }
  0xec   :  { %801 = vmatmul.mubr.msk.f32.gmra.mxu1 %vm56_vm0, %v263_v4 }
  0xed   :  { %v264_v8 = vmax.f32 %v242_v7, 0.0  ;;  %v617_v3 = vrot.slane %v612_v2, %v616_v1 }
  0xef   :  { %803 = vmatprep.mubr.msk.f32.mxu1 %vm56_vm0, %v264_v8 }
  0xf0   :  { %804 = vmatmul.mubr.msk.f32.gmra.mxu1 %vm56_vm0, %v265_v9 }
 0x194   :  { %v1024_v13 = vpop.f32.mrf.mxu1 }
 0x195   :  { %v397_v57 = vadd.f32 %v1024_v13, %v651_v27 }
 0x196   :  { %v1026_v14 = vpop.f32.mrf.mxu1 }
 0x197   :  { %v471_v59 = vmax.f32 %v397_v57, 0.0  ;;  %v392_v60 = vadd.f32 %v651_v27, %v1026_v14 }
 0x198   :  { %v787_v15 = vpop.f32.mrf.mxu1 }
 0x199   :  { %v407_v53 = vadd.f32 %v787_v15, %v651_v27  ;;  %v470_v61 = vmax.f32 %v392_v60, 0.0 }
 0x19a   :  { %v1028_v16 = vpop.f32.mrf.mxu1 }
 0x19b   :  { %v473_v55 = vmax.f32 %v407_v53, 0.0  ;;  %v402_v56 = vadd.f32 %v651_v27, %v1028_v16 }
 0x19c   :  { %v790_v17 = vpop.f32.mrf.mxu1 }
 0x19d   :  { %v417_v49 = vadd.f32 %v790_v17, %v651_v27  ;;  %v472_v58 = vmax.f32 %v402_v56, 0.0 }
 0x19e   :  { %v411_v18 = vpop.f32.mrf.mxu1 }
 0x19f   :  { %v475_v51 = vmax.f32 %v417_v49, 0.0  ;;  %v412_v52 = vadd.f32 %v651_v27, %v411_v18 }
 0x1a0   :  { %v793_v19 = vpop.f32.mrf.mxu1 }
 0x1a1   :  { %v427_v45 = vadd.f32 %v793_v19, %v651_v27  ;;  %v474_v54 = vmax.f32 %v412_v52, 0.0 }
 0x1a2   :  { %v421_v20 = vpop.f32.mrf.mxu1 }
 0x1a3   :  { %v477_v47 = vmax.f32 %v427_v45, 0.0  ;;  %v422_v48 = vadd.f32 %v651_v27, %v421_v20 }
 0x1a4   :  { %v796_v21 = vpop.f32.mrf.mxu1 }
 0x1a5   :  { %v437_v41 = vadd.f32 %v796_v21, %v651_v27  ;;  %v476_v50 = vmax.f32 %v422_v48, 0.0 }
 0x1a6   :  { %v431_v22 = vpop.f32.mrf.mxu1 }
 0x1a7   :  { %v479_v43 = vmax.f32 %v437_v41, 0.0  ;;  %v432_v44 = vadd.f32 %v651_v27, %v431_v22 }
 0x1a8   :  { %v799_v23 = vpop.f32.mrf.mxu1 }
 0x1a9   :  { %v447_v37 = vadd.f32 %v799_v23, %v651_v27  ;;  %v478_v46 = vmax.f32 %v432_v44, 0.0 }
 0x1aa   :  { %v441_v24 = vpop.f32.mrf.mxu1 }
 0x1ab   :  { %v481_v39 = vmax.f32 %v447_v37, 0.0  ;;  %v442_v40 = vadd.f32 %v651_v27, %v441_v24 }
 0x1ac   :  { %v802_v25 = vpop.f32.mrf.mxu1 }
 0x1ad   :  { %v457_v33 = vadd.f32 %v802_v25, %v651_v27  ;;  %v480_v42 = vmax.f32 %v442_v40, 0.0 }
 0x1ae   :  { %v451_v26 = vpop.f32.mrf.mxu1 }
 0x1af   :  { %v483_v35 = vmax.f32 %v457_v33, 0.0  ;;  %v452_v36 = vadd.f32 %v651_v27, %v451_v26 }
 0x1b0   :  { %v805_v28 = vpop.f32.mrf.mxu1 }
 0x1b1   :  { %v467_v29 = vadd.f32 %v805_v28, %v651_v27  ;;  %v482_v38 = vmax.f32 %v452_v36, 0.0 }
 0x1b2   :  { %v461_v30 = vpop.f32.mrf.mxu1 }
 0x1b3   :  { %v485_v31 = vmax.f32 %v467_v29, 0.0  ;;  %v462_v32 = vadd.f32 %v651_v27, %v461_v30 }
 0x1b5   :  { %807 = vmatpush3.xpose.msk.msra.mxu0 %vm56_vm0, %v485_v31  ;;  %v484_v34 = vmax.f32 %v462_v32, 0.0 }
 0x1b6   :  { %808 = vmatprep.subr.mxu0 %v868_v10 }
 0x1b9   :  { %809 = vmatpush3.xpose.msk.msra.mxu0 %vm56_vm0, %v484_v34 }
 0x1ba   :  { %810 = vmatprep.subr.mxu0 %v868_v10 }
 0x1bd   :  { %811 = vmatpush3.xpose.msk.msra.mxu0 %vm56_vm0, %v483_v35 }
 0x1be   :  { %812 = vmatprep.subr.mxu0 %v868_v10 }
 0x1c1   :  { %813 = vmatpush3.xpose.msk.msra.mxu0 %vm56_vm0, %v482_v38 }
 0x1c2   :  { %814 = vmatprep.subr.mxu0 %v868_v10 }
 0x1c5   :  { %815 = vmatpush3.xpose.msk.msra.mxu0 %vm56_vm0, %v481_v39 }
 0x1c6   :  { %816 = vmatprep.subr.mxu0 %v868_v10 }
 0x1c9   :  { %817 = vmatpush3.xpose.msk.msra.mxu0 %vm56_vm0, %v480_v42 }
 0x1ca   :  { %818 = vmatprep.subr.mxu0 %v868_v10 }
 0x1cd   :  { %819 = vmatpush3.xpose.msk.msra.mxu0 %vm56_vm0, %v479_v43 }
 0x1ce   :  { %820 = vmatprep.subr.mxu0 %v868_v10 }
 0x1d1   :  { %821 = vmatpush3.xpose.msk.msra.mxu0 %vm56_vm0, %v478_v46 }
 0x1d2   :  { %822 = vmatprep.subr.mxu0 %v868_v10 }
 0x1d5   :  { %823 = vmatpush3.xpose.msk.msra.mxu0 %vm56_vm0, %v477_v47 }
 0x1d6   :  { %824 = vmatprep.subr.mxu0 %v868_v10 }
 0x1d9   :  { %825 = vmatpush3.xpose.msk.msra.mxu0 %vm56_vm0, %v476_v50 }
 0x1da   :  { %826 = vmatprep.subr.mxu0 %v868_v10 }
 0x1dd   :  { %827 = vmatpush3.xpose.msk.msra.mxu0 %vm56_vm0, %v475_v51 }
 0x1de   :  { %828 = vmatprep.subr.mxu0 %v868_v10 }
 0x1e1   :  { %829 = vmatpush3.xpose.msk.msra.mxu0 %vm56_vm0, %v474_v54 }
 0x1e2   :  { %830 = vmatprep.subr.mxu0 %v868_v10 }
 0x1e5   :  { %831 = vmatpush3.xpose.msk.msra.mxu0 %vm56_vm0, %v473_v55 }
 0x1e6   :  { %832 = vmatprep.subr.mxu0 %v868_v10 }
 0x1e9   :  { %833 = vmatpush3.xpose.msk.msra.mxu0 %vm56_vm0, %v472_v58 }
 0x1ea   :  { %834 = vmatprep.subr.mxu0 %v868_v10 }
 0x1ed   :  { %835 = vmatpush3.xpose.msk.msra.mxu0 %vm56_vm0, %v471_v59 }
 0x1ee   :  { %836 = vmatprep.subr.mxu0 %v868_v10 }
 0x1f1   :  { %837 = vmatpush3.xpose.msk.msra.mxu0 %vm56_vm0, %v470_v61 }
 0x1f4   :  { %839 = vmatmul.mubr.msk.f32.vlgmr.msra.gmra.mxu0 %vm56_vm0, %v486_v62 }
 0x2b4   :  { %v605_v4 = vpop.f32.mrf.mxu0 }
 0x2b5   :  { %v618_v5 = vadd.f32 %v617_v3, %v605_v4 }
 0x2b6   :  { %v840_v6 = vpop.f32.mrf.mxu0 }
 0x2b7   :  { %619 = vst [vmem:[#allocation3] sm:$0x1] %v618_v5 }
 0x2b8   :  { %857 = shalt.err (!%p854_p4)
}
 0x2b9   :  { %629 = dma.vmem_to_hbm [thread:$0]  %s627_s27, 16, %s1081_s7, [#allocation4]  }
 0x2ba   :  { %866 = dma.done.wait [#allocation4], 16  }
 0x2bb   :  { %867 = vsyncadd [#allocation4], 4294967280 }
 0x2bc   :  { %633 = vsyncpa [#allocation4], 1 }

</bundles_post_ra>
